<compile_context>
chip_gen: v5e
topology: v5e:2x2
jax: 0.10.0
libtpu: 0.0.40
codegen_flags: <defaults>
</compile_context>

<pallas_src>
import jax
import jax.numpy as jnp
from jax import lax
from jax.experimental import pallas as pl
from jax.experimental.pallas import tpu as pltpu

NUM_INPUT = 38
H1 = 30
H2 = 20
OUT = 1

TILE_B_DEFAULT = 2048  # rows of x per grid step; must be a multiple of 128 (lane width)


def mlp_kernel(x_ref, w1_ref, b1_ref, w2_ref, b2_ref, w3_ref, b3_ref, o_ref):
    # x_ref: (tile_b, 38)   w1: (30, 38)  b1: (30, 1)
    # Layer 1: h1 = relu(W1 @ x^T + b1)  -> (30, tile_b), batch on the lane axis.
    x = x_ref[...]
    h1 = lax.dot_general(
        w1_ref[...], x,
        (((1,), (1,)), ((), ())),            # contract feature axes (rhs transposed)
        preferred_element_type=jnp.float32,
    )
    h1 = jnp.maximum(h1 + b1_ref[...], 0.0)

    # Layer 2: (20, 30) @ (30, tile_b) -> (20, tile_b)
    h2 = jnp.dot(w2_ref[...], h1, preferred_element_type=jnp.float32)
    h2 = jnp.maximum(h2 + b2_ref[...], 0.0)

    # Layer 3: (1, 20) @ (20, tile_b) -> (1, tile_b), then sigmoid. Lane-dense store.
    h3 = jnp.dot(w3_ref[...], h2, preferred_element_type=jnp.float32)
    h3 = h3 + b3_ref[...]
    o_ref[...] = (1.0 / (1.0 + jnp.exp(-h3))).astype(o_ref.dtype)


def net_forward(x, params, tile_b=TILE_B_DEFAULT):
    """x: (B, 38) float32. Returns (B, 1) float32, matching the PyTorch Net forward."""
    w1, b1, w2, b2, w3, b3 = params
    B = x.shape[0]

    # Clamp tile for small batches; keep it a multiple of 128 for lane-dense output blocks.
    tile_b = min(tile_b, pl.cdiv(B, 128) * 128)
    assert tile_b % 128 == 0

    # Pad batch to a multiple of the tile (padded rows are zeros; sliced off afterwards).
    Bp = pl.cdiv(B, tile_b) * tile_b
    if Bp != B:
        x = jnp.pad(x, ((0, Bp - B), (0, 0)))

    grid = (Bp // tile_b,)

    const = lambda shape: pl.BlockSpec(shape, lambda i: (0, 0))  # VMEM-resident params

    out_t = pl.pallas_call(
        mlp_kernel,
        out_shape=jax.ShapeDtypeStruct((1, Bp), jnp.float32),
        grid=grid,
        in_specs=[
            pl.BlockSpec((tile_b, NUM_INPUT), lambda i: (i, 0)),  # x: streamed per tile
            const((H1, NUM_INPUT)),
            const((H1, 1)),
            const((H2, H1)),
            const((H2, 1)),
            const((OUT, H2)),
            const((OUT, 1)),
        ],
        out_specs=pl.BlockSpec((1, tile_b), lambda i: (0, i)),   # lane-dense (1, tile_b)
        compiler_params=pltpu.CompilerParams(
            dimension_semantics=("parallel",),
        ),
    )(x, w1, b1, w2, b2, w3, b3)

    # (1, Bp) -> (B, 1), dropping batch padding.
    return out_t[0, :B].reshape(B, OUT)


def init_params(key):
    """PyTorch nn.Linear default init: U(-1/sqrt(fan_in), 1/sqrt(fan_in)).
    Weights kept in PyTorch layout (out_features, in_features); biases as (out_features, 1)."""
    def linear(key, fan_in, fan_out):
        kw, kb = jax.random.split(key)
        bound = 1.0 / jnp.sqrt(fan_in)
        w = jax.random.uniform(kw, (fan_out, fan_in), jnp.float32, -bound, bound)
        b = jax.random.uniform(kb, (fan_out, 1), jnp.float32, -bound, bound)
        return w, b

    k1, k2, k3 = jax.random.split(key, 3)
    w1, b1 = linear(k1, NUM_INPUT, H1)
    w2, b2 = linear(k2, H1, H2)
    w3, b3 = linear(k3, H2, OUT)
    return (w1, b1, w2, b2, w3, b3)


def reference_forward(x, params):
    """Plain-JAX reference of the PyTorch forward for correctness checking."""
    w1, b1, w2, b2, w3, b3 = params
    h = jnp.maximum(x @ w1.T + b1[:, 0], 0.0)
    h = jnp.maximum(h @ w2.T + b2[:, 0], 0.0)
    return jax.nn.sigmoid(h @ w3.T + b3[:, 0])


if __name__ == "__main__":
    key = jax.random.PRNGKey(0)
    k_params, k_x = jax.random.split(key)

    params = init_params(k_params)
    batch = 8
    x = jax.random.normal(k_x, (batch, NUM_INPUT), jnp.float32)

    out = net_forward(x, params)
    out = jax.block_until_ready(out)

    ref = reference_forward(x, params)
    assert out.shape == (batch, OUT)
    assert jnp.allclose(out, ref, atol=1e-5, rtol=1e-5), "mismatch vs reference"

    print("KERNEL_OK")
</pallas_src>

<mosaic_0001>
module attributes {stable_mosaic.version = 11 : i64} {
  func.func @mlp_kernel(%arg0: i32, %arg1: memref<128x38xf32, #tpu.memory_space<vmem>>, %arg2: memref<30x38xf32, #tpu.memory_space<vmem>>, %arg3: memref<30x1xf32, #tpu.memory_space<vmem>>, %arg4: memref<20x30xf32, #tpu.memory_space<vmem>>, %arg5: memref<20x1xf32, #tpu.memory_space<vmem>>, %arg6: memref<1x20xf32, #tpu.memory_space<vmem>>, %arg7: memref<1x1xf32, #tpu.memory_space<vmem>>, %arg8: memref<1x128xf32, #tpu.memory_space<vmem>>) attributes {dimension_semantics = [#tpu.dimension_semantics<parallel>], iteration_bounds = array<i64: 1>, scalar_prefetch = 0 : i64, scratch_operands = 0 : i64, tpu.core_type = #tpu.core_type<tc>, window_params = [{transform_indices = @transform_0, window_bounds = array<i64: 128, 38>}, {pipeline_mode = #tpu.pipeline_mode<synchronous>, transform_indices = @transform_1, window_bounds = array<i64: 30, 38>}, {pipeline_mode = #tpu.pipeline_mode<synchronous>, transform_indices = @transform_2, window_bounds = array<i64: 30, 1>}, {pipeline_mode = #tpu.pipeline_mode<synchronous>, transform_indices = @transform_3, window_bounds = array<i64: 20, 30>}, {pipeline_mode = #tpu.pipeline_mode<synchronous>, transform_indices = @transform_4, window_bounds = array<i64: 20, 1>}, {pipeline_mode = #tpu.pipeline_mode<synchronous>, transform_indices = @transform_5, window_bounds = array<i64: 1, 20>}, {pipeline_mode = #tpu.pipeline_mode<synchronous>, transform_indices = @transform_6, window_bounds = array<i64: 1, 1>}, {transform_indices = @transform_7, window_bounds = array<i64: 1, 128>}]} {
    %c0 = arith.constant 0 : index
    %c0_0 = arith.constant 0 : index
    %0 = vector.load %arg1[%c0, %c0_0] : memref<128x38xf32, #tpu.memory_space<vmem>>, vector<128x38xf32>
    %c0_1 = arith.constant 0 : index
    %c0_2 = arith.constant 0 : index
    %1 = vector.load %arg2[%c0_1, %c0_2] : memref<30x38xf32, #tpu.memory_space<vmem>>, vector<30x38xf32>
    %cst = arith.constant dense<0.000000e+00> : vector<30x128xf32>
    %2 = tpu.matmul %1, %0, %cst {dimension_numbers = #tpu.dot_dimension_numbers<[1], [1], [0], [0], [0, 0, 1, 0], [], []>} : vector<30x38xf32>, vector<128x38xf32>, vector<30x128xf32> -> vector<30x128xf32>
    %c0_3 = arith.constant 0 : index
    %c0_4 = arith.constant 0 : index
    %3 = vector.load %arg3[%c0_3, %c0_4] : memref<30x1xf32, #tpu.memory_space<vmem>>, vector<30x1xf32>
    %4 = vector.broadcast %3 : vector<30x1xf32> to vector<30x128xf32>
    %5 = arith.addf %2, %4 : vector<30x128xf32>
    %cst_5 = arith.constant 0.000000e+00 : f32
    %6 = vector.broadcast %cst_5 : f32 to vector<30x128xf32>
    %7 = arith.maximumf %5, %6 : vector<30x128xf32>
    %c0_6 = arith.constant 0 : index
    %c0_7 = arith.constant 0 : index
    %8 = vector.load %arg4[%c0_6, %c0_7] : memref<20x30xf32, #tpu.memory_space<vmem>>, vector<20x30xf32>
    %cst_8 = arith.constant dense<0.000000e+00> : vector<20x128xf32>
    %9 = tpu.matmul %8, %7, %cst_8 {dimension_numbers = #tpu.dot_dimension_numbers<[1], [0], [0], [1], [0, 0, 1, 1], [], []>} : vector<20x30xf32>, vector<30x128xf32>, vector<20x128xf32> -> vector<20x128xf32>
    %c0_9 = arith.constant 0 : index
    %c0_10 = arith.constant 0 : index
    %10 = vector.load %arg5[%c0_9, %c0_10] : memref<20x1xf32, #tpu.memory_space<vmem>>, vector<20x1xf32>
    %11 = vector.broadcast %10 : vector<20x1xf32> to vector<20x128xf32>
    %12 = arith.addf %9, %11 : vector<20x128xf32>
    %cst_11 = arith.constant 0.000000e+00 : f32
    %13 = vector.broadcast %cst_11 : f32 to vector<20x128xf32>
    %14 = arith.maximumf %12, %13 : vector<20x128xf32>
    %c0_12 = arith.constant 0 : index
    %c0_13 = arith.constant 0 : index
    %15 = vector.load %arg6[%c0_12, %c0_13] : memref<1x20xf32, #tpu.memory_space<vmem>>, vector<1x20xf32>
    %cst_14 = arith.constant dense<0.000000e+00> : vector<1x128xf32>
    %16 = tpu.matmul %15, %14, %cst_14 {dimension_numbers = #tpu.dot_dimension_numbers<[1], [0], [0], [1], [0, 0, 1, 1], [], []>} : vector<1x20xf32>, vector<20x128xf32>, vector<1x128xf32> -> vector<1x128xf32>
    %c0_15 = arith.constant 0 : index
    %c0_16 = arith.constant 0 : index
    %17 = vector.load %arg7[%c0_15, %c0_16] : memref<1x1xf32, #tpu.memory_space<vmem>>, vector<1x1xf32>
    %18 = vector.broadcast %17 : vector<1x1xf32> to vector<1x128xf32>
    %19 = arith.addf %16, %18 : vector<1x128xf32>
    %cst_17 = arith.constant 0.000000e+00 : f32
    %20 = vector.broadcast %cst_17 : f32 to vector<1x128xf32>
    %21 = arith.subf %20, %19 : vector<1x128xf32>
    %22 = math.exp %21 : vector<1x128xf32>
    %cst_18 = arith.constant 1.000000e+00 : f32
    %23 = vector.broadcast %cst_18 : f32 to vector<1x128xf32>
    %24 = arith.addf %23, %22 : vector<1x128xf32>
    %cst_19 = arith.constant 1.000000e+00 : f32
    %25 = vector.broadcast %cst_19 : f32 to vector<1x128xf32>
    %26 = arith.divf %25, %24 : vector<1x128xf32>
    %c0_20 = arith.constant 0 : index
    %c0_21 = arith.constant 0 : index
    %27 = vector.load %arg8[%c0_20, %c0_21] : memref<1x128xf32, #tpu.memory_space<vmem>>, vector<1x128xf32>
    tpu.vector_store %arg8[%c0_20, %c0_21], %26 {strides = array<i32>} : memref<1x128xf32, #tpu.memory_space<vmem>>, vector<1x128xf32>,
    return
  }
  func.func @transform_0(%arg0: i32) -> (i32, i32) {
    %c0_i32 = arith.constant 0 : i32
    %c0_i32_0 = arith.constant 0 : i32
    return %arg0, %c0_i32 : i32, i32
  }
  func.func @transform_1(%arg0: i32) -> (i32, i32) {
    %c0_i32 = arith.constant 0 : i32
    %c0_i32_0 = arith.constant 0 : i32
    %c0_i32_1 = arith.constant 0 : i32
    return %c0_i32, %c0_i32_0 : i32, i32
  }
  func.func @transform_2(%arg0: i32) -> (i32, i32) {
    %c0_i32 = arith.constant 0 : i32
    %c0_i32_0 = arith.constant 0 : i32
    %c0_i32_1 = arith.constant 0 : i32
    return %c0_i32, %c0_i32_0 : i32, i32
  }
  func.func @transform_3(%arg0: i32) -> (i32, i32) {
    %c0_i32 = arith.constant 0 : i32
    %c0_i32_0 = arith.constant 0 : i32
    %c0_i32_1 = arith.constant 0 : i32
    return %c0_i32, %c0_i32_0 : i32, i32
  }
  func.func @transform_4(%arg0: i32) -> (i32, i32) {
    %c0_i32 = arith.constant 0 : i32
    %c0_i32_0 = arith.constant 0 : i32
    %c0_i32_1 = arith.constant 0 : i32
    return %c0_i32, %c0_i32_0 : i32, i32
  }
  func.func @transform_5(%arg0: i32) -> (i32, i32) {
    %c0_i32 = arith.constant 0 : i32
    %c0_i32_0 = arith.constant 0 : i32
    %c0_i32_1 = arith.constant 0 : i32
    return %c0_i32, %c0_i32_0 : i32, i32
  }
  func.func @transform_6(%arg0: i32) -> (i32, i32) {
    %c0_i32 = arith.constant 0 : i32
    %c0_i32_0 = arith.constant 0 : i32
    %c0_i32_1 = arith.constant 0 : i32
    return %c0_i32, %c0_i32_0 : i32, i32
  }
  func.func @transform_7(%arg0: i32) -> (i32, i32) {
    %c0_i32 = arith.constant 0 : i32
    %c0_i32_0 = arith.constant 0 : i32
    return %c0_i32, %arg0 : i32, i32
  }
}

</mosaic_0001>

<bundles_post_ra>
// kernel: tpu_custom_call.1
= control target key start
LH: loop header
LB: loop body
LE: loop exit
PB: predicated region body
PF: predicated region fallthrough
CT: control target
= control target key end

     0   :  { %s557_s0 = inlined_call_operand.vmem [shape: f32[128,38], index: 0, kind: input, shape index: {}]   ;;  %s558_s1 = inlined_call_operand.vmem [shape: f32[30,38], index: 1, kind: input, shape index: {}]   ;;  %s559_s2 = inlined_call_operand.vmem [shape: f32[30,1], index: 2, kind: input, shape index: {}]   ;;  %s560_s3 = inlined_call_operand.vmem [shape: f32[20,30], index: 3, kind: input, shape index: {}]   ;;  %s561_s4 = inlined_call_operand.vmem [shape: f32[20,1], index: 4, kind: input, shape index: {}]   ;;  %s562_s5 = inlined_call_operand.vmem [shape: f32[1,20], index: 5, kind: input, shape index: {}]   ;;  %s563_s6 = inlined_call_operand.<no memory space> [shape: f32[1,1], index: 6, kind: input, shape index: {}]   ;;  %s564_s7 = inlined_call_operand.hbm [shape: f32[1,128], index: 7, kind: output, shape index: {}]  }
   0x1   :  { %v12_v0 = vstv %s563_s6 }
   0x2   :  { %13 = vst [vmem:[#allocation2] sm:$0x1] %v12_v0 }
   0x3   :  { %v44_v1 = vld [vmem:[%s557_s0 + $0x78] sm:$0xff]  ;;  %vm73_vm0 = vcmask 310272   ;;  %v43_v2 = vld [vmem:[%s557_s0 + $0x70] sm:$0xff] }
   0x4   :  { %329 = vmatpush.xpose.msk.msra.mxu3 %vm73_vm0, %v44_v1  ;;  %303 = vmatpush.xpose.msk.msra.mxu0 %vm73_vm0, %v44_v1 }
   0x5   :  { %14 = vsyncpa [#allocation4], 0  ;;  %v42_v3 = vld [vmem:[%s557_s0 + $0x68] sm:$0xff]  ;;  %v41_v4 = vld [vmem:[%s557_s0 + $0x60] sm:$0xff]  ;;  %v380_v15 = vmov 0   ;;  %vm198_vm1 = vcmask 1045504  }
   0x6   :  { %v40_v5 = vld [vmem:[%s557_s0 + $0x58] sm:$0xff]  ;;  %v39_v6 = vld [vmem:[%s557_s0 + $0x50] sm:$0xff]  ;;  %v38_v7 = vld [vmem:[%s557_s0 + $0x48] sm:$0xff]  ;;  %347 = vset.pattern.permute.xlu0 %v380_v15  ;;  %348 = vset.pattern.permute.xlu1 %v380_v15  ;;  %vm188_vm2 = vcmask 244736   ;;  %vm243_vm3 = vcmask 1043456   ;;  %vm239_vm4 = vcmask 162816  }
   0x7   :  { %v37_v8 = vld [vmem:[%s557_s0 + $0x40] sm:$0xff]  ;;  %v36_v9 = vld [vmem:[%s557_s0 + $0x38] sm:$0xff]  ;;  %v35_v10 = vld [vmem:[%s557_s0 + $0x30] sm:$0xff]  ;;  %349 = vset.pattern.permute.xlu2 %v380_v15  ;;  %s294_s14 = sshll.u32 %s564_s7, 4  ;;  %s295_s14 = int_to_ptr.hbm [resolvable:$true] %s294_s14 }
   0x8   :  { %330 = vmatpush.xpose.msk.msra.mxu3 %vm73_vm0, %v43_v2  ;;  %304 = vmatpush.xpose.msk.msra.mxu0 %vm73_vm0, %v43_v2  ;;  %v34_v11 = vld [vmem:[%s557_s0 + $0x28] sm:$0xff]  ;;  %v52_v12 = vld [vmem:[%s559_s2 + $0x18] sm:$0x3f]  ;;  %v33_v14 = vld [vmem:[%s557_s0 + $0x20] sm:$0xff] }
   0x9   :  { %v50_v13 = vld [vmem:[%s559_s2 + $0x8] sm:$0xff]  ;;  %70 = vperm.xlu0 %347, %v52_v12   ;;  %v32_v16 = vld [vmem:[%s557_s0 + $0x18] sm:$0xff]  ;;  %v51_v17 = vld [vmem:[%s559_s2 + $0x10] sm:$0xff] }
   0xa   :  { %60 = vperm.xlu1 %348, %v50_v13   ;;  %v49_v18 = vld [vmem:[%s559_s2] sm:$0xff]  ;;  %v31_v19 = vld [vmem:[%s557_s0 + $0x10] sm:$0xff]  ;;  %v30_v20 = vld [vmem:[%s557_s0 + $0x8] sm:$0xff] }
   0xb   :  { %v170_v21 = vld [vmem:[%s561_s4] sm:$0xff]  ;;  %v46_v24 = vld [vmem:[%s558_s1 + $0x8] sm:$0xff]  ;;  %v47_v26 = vld [vmem:[%s558_s1 + $0x10] sm:$0xff] }
   0xc   :  { %331 = vmatpush.xpose.msk.msra.mxu3 %vm73_vm0, %v42_v3  ;;  %305 = vmatpush.xpose.msk.msra.mxu0 %vm73_vm0, %v42_v3  ;;  %v232_v22 = vld [vmem:[#allocation2] sm:$0x1]  ;;  %v48_v27 = vld [vmem:[%s558_s1 + $0x18] sm:$0x3f]  ;;  %v172_v32 = vld [vmem:[%s561_s4 + $0x10] sm:$0xf] }
   0xd   :  { %v29_v23 = vld [vmem:[%s557_s0] sm:$0xff]  ;;  %185 = vperm.xlu2 %349, %v172_v32   ;;  %v171_v38 = vld [vmem:[%s561_s4 + $0x8] sm:$0xff]  ;;  %v169_v48 = vld [vmem:[%s560_s3 + $0x10] sm:$0xf] }
   0xe   :  { %v45_v25 = vld [vmem:[%s558_s1] sm:$0xff]  ;;  %v168_v47 = vld [vmem:[%s560_s3 + $0x8] sm:$0xff] }
   0xf   :  { %v167_v46 = vld [vmem:[%s560_s3] sm:$0xff]  ;;  %s381_s3 = smov [#allocation3]  }
  0x10   :  { %332 = vmatpush.xpose.msk.msra.mxu3 %vm73_vm0, %v41_v4  ;;  %306 = vmatpush.xpose.msk.msra.mxu0 %vm73_vm0, %v41_v4  ;;  %v231_v61 = vld [vmem:[%s562_s5] sm:$0x1]  ;;  %s292_s5 = sshll.u32 %s381_s3, 4  ;;  %s293_s5 = int_to_ptr.vmem [resolvable:$true] %s292_s5 }
  0x11   :  { %65 = vperm.xlu0 %347, %v51_v17  }
  0x12   :  { %55 = vperm.xlu1 %348, %v49_v18  }
  0x14   :  { %333 = vmatpush.xpose.msk.msra.mxu3 %vm73_vm0, %v40_v5  ;;  %307 = vmatpush.xpose.msk.msra.mxu0 %vm73_vm0, %v40_v5 }
  0x15   :  { %180 = vperm.xlu2 %349, %v171_v38  }
  0x18   :  { %334 = vmatpush.xpose.msk.msra.mxu3 %vm73_vm0, %v39_v6  ;;  %308 = vmatpush.xpose.msk.msra.mxu0 %vm73_vm0, %v39_v6 }
  0x19   :  { %175 = vperm.xlu0 %347, %v170_v21  }
  0x1a   :  { %235 = vperm.xlu1 %348, %v232_v22  }
  0x1c   :  { %335 = vmatpush.xpose.msk.msra.mxu3 %vm73_vm0, %v38_v7  ;;  %309 = vmatpush.xpose.msk.msra.mxu0 %vm73_vm0, %v38_v7 }
  0x20   :  { %336 = vmatpush.xpose.msk.msra.mxu3 %vm73_vm0, %v37_v8  ;;  %310 = vmatpush.xpose.msk.msra.mxu0 %vm73_vm0, %v37_v8 }
  0x24   :  { %337 = vmatpush.xpose.msk.msra.mxu3 %vm73_vm0, %v36_v9  ;;  %311 = vmatpush.xpose.msk.msra.mxu0 %vm73_vm0, %v36_v9 }
  0x28   :  { %338 = vmatpush.xpose.msk.msra.mxu3 %vm73_vm0, %v35_v10  ;;  %312 = vmatpush.xpose.msk.msra.mxu0 %vm73_vm0, %v35_v10 }
  0x2c   :  { %339 = vmatpush.xpose.msk.msra.mxu3 %vm73_vm0, %v34_v11  ;;  %313 = vmatpush.xpose.msk.msra.mxu0 %vm73_vm0, %v34_v11 }
  0x30   :  { %340 = vmatpush.xpose.msk.msra.mxu3 %vm73_vm0, %v33_v14  ;;  %314 = vmatpush.xpose.msk.msra.mxu0 %vm73_vm0, %v33_v14 }
  0x34   :  { %341 = vmatpush.xpose.msk.msra.mxu3 %vm73_vm0, %v32_v16  ;;  %315 = vmatpush.xpose.msk.msra.mxu0 %vm73_vm0, %v32_v16 }
  0x38   :  { %342 = vmatpush.xpose.msk.msra.mxu3 %vm73_vm0, %v31_v19  ;;  %316 = vmatpush.xpose.msk.msra.mxu0 %vm73_vm0, %v31_v19 }
  0x3c   :  { %343 = vmatpush.xpose.msk.msra.mxu3 %vm73_vm0, %v30_v20  ;;  %317 = vmatpush.xpose.msk.msra.mxu0 %vm73_vm0, %v30_v20 }
  0x40   :  { %344 = vmatpush.xpose.msk.msra.mxu3 %vm73_vm0, %v29_v23  ;;  %318 = vmatpush.xpose.msk.msra.mxu0 %vm73_vm0, %v29_v23 }
  0x43   :  { %320 = vmatmul.msk.f32.vlgmr.msra.gmra.mxu3 %vm73_vm0, %v46_v24  ;;  %319 = vmatmul.msk.f32.vlgmr.msra.gmra.mxu0 %vm73_vm0, %v45_v25 }
  0x4b   :  { %321 = vmatmul.msk.f32.gmra.mxu3 %vm73_vm0, %v47_v26 }
  0x53   :  { %322 = vmatmul.msk.f32.gmra.mxu3 %vm73_vm0, %v48_v27 }
  0x67   :  { %v186_v50 = vpop.permute.xlu2 %185 }
  0x6f   :  { %v181_v52 = vpop.permute.xlu2 %180 }
  0x7b   :  { %v71_v29 = vpop.permute.xlu0 %70 }
  0x7c   :  { %v61_v31 = vpop.permute.xlu1 %60 }
  0x83   :  { %v66_v33 = vpop.permute.xlu0 %65 }
  0x84   :  { %v56_v41 = vpop.permute.xlu1 %55 }
  0x8b   :  { %v176_v56 = vpop.permute.xlu0 %175 }
  0x8c   :  { %v236_v62 = vpop.permute.xlu1 %235 }
  0x8d   :  { %v238_v63 = vperm.slane %v236_v62, 0 }
  0xc0   :  { %v151_v37 = vpop.f32.mrf.mxu0 }
  0xc1   :  { %v152_v43 = vadd.f32 %v151_v37, %v56_v41 }
  0xc3   :  { %v163_v45 = vmax.f32 %v152_v43, 0.0 }
  0xc6   :  { %v154_v28 = vpop.f32.mrf.mxu3 }
  0xc7   :  { %v155_v39 = vadd.f32 %v154_v28, %v61_v31 }
  0xc9   :  { %v164_v44 = vmax.f32 %v155_v39, 0.0 }
  0xce   :  { %v157_v30 = vpop.f32.mrf.mxu3 }
  0xcf   :  { %v158_v35 = vadd.f32 %v157_v30, %v66_v33 }
  0xd1   :  { %v165_v42 = vmax.f32 %v158_v35, 0.0 }
  0xd6   :  { %v160_v34 = vpop.f32.mrf.mxu3 }
  0xd7   :  { %v161_v36 = vadd.f32 %v160_v34, %v71_v29 }
  0xd9   :  { %v166_v40 = vmax.f32 %v161_v36, 0.0 }
  0xdb   :  { %323 = vmatpush.msk.msra.mxu1 %vm198_vm1, %v166_v40 }
  0xdd   :  { %215 = vmatpush.msra.mxu1 %v165_v42 }
  0xdf   :  { %216 = vmatpush.msra.mxu1 %v164_v44 }
  0xe1   :  { %217 = vmatpush.msra.mxu1 %v163_v45 }
  0xe2   :  { %324 = vmatmul.msk.f32.vlgmr.msra.gmra.mxu1 %vm188_vm2, %v167_v46 }
  0xea   :  { %325 = vmatmul.msk.f32.gmra.mxu1 %vm188_vm2, %v168_v47 }
  0xf2   :  { %326 = vmatmul.msk.f32.gmra.mxu1 %vm188_vm2, %v169_v48 }
 0x15f   :  { %v219_v49 = vpop.f32.mrf.mxu1 }
 0x160   :  { %v220_v57 = vadd.f32 %v219_v49, %v176_v56 }
 0x162   :  { %v228_v60 = vmax.f32 %v220_v57, 0.0 }
 0x167   :  { %v222_v51 = vpop.f32.mrf.mxu1 }
 0x168   :  { %v223_v54 = vadd.f32 %v222_v51, %v181_v52 }
 0x16a   :  { %v229_v59 = vmax.f32 %v223_v54, 0.0 }
 0x16f   :  { %v225_v53 = vpop.f32.mrf.mxu1 }
 0x170   :  { %v226_v55 = vadd.f32 %v225_v53, %v186_v50 }
 0x172   :  { %v230_v58 = vmax.f32 %v226_v55, 0.0 }
 0x174   :  { %327 = vmatpush.msk.msra.mxu2 %vm243_vm3, %v230_v58 }
 0x176   :  { %261 = vmatpush.msra.mxu2 %v229_v59 }
 0x178   :  { %262 = vmatpush.msra.mxu2 %v228_v60 }
 0x179   :  { %328 = vmatmul.msk.f32.vlgmr.msra.gmra.mxu2 %vm239_vm4, %v231_v61 }
 0x1fc   :  { %v264_v0 = vpop.f32.mrf.mxu2 }
 0x1fd   :  { %v265_v1 = vadd.f32 %v264_v0, %v238_v63 }
 0x1ff   :  { %v267_v2 = vsub.f32 0.0, %v265_v1 }
 0x201   :  { %v268_v3 = vmul.f32 1.442695, %v267_v2 }
 0x203   :  { %350 = vpow2.f32 %v268_v3 }
 0x209   :  { %v351_v4 = vpop.eup %350 }
 0x20a   :  { %v270_v5 = vadd.f32 1.0, %v351_v4 }
 0x20c   :  { %352 = vrcp.f32 %v270_v5  ;;  %v282_v9 = vand.u32 2147483648, %v270_v5  ;;  %v280_v11 = vand.u32 2147483647, %v270_v5  ;;  %vm276_vm6 = vweird.f32 %v270_v5 }
 0x20e   :  { %v283_v13 = vor.u32 1.1754944e-38, %v282_v9  ;;  %vm281_vm8 = vcmp.eq.f32.partialorder %v280_v11, 8.507059e+37 }
 0x212   :  { %v353_v6 = vpop.eup %352 }
 0x213   :  { %v272_v7 = vmul.f32 %v353_v6, %v270_v5  ;;  %vm277_vm5 = vweird.f32 %v353_v6 }
 0x214   :  { %vm278_vm7 = vmor %vm276_vm6, %vm277_vm5 }
 0x215   :  { %v273_v8 = vsub.f32 1.0, %v272_v7 }
 0x217   :  { %v274_v10 = vmul.f32 %v353_v6, %v273_v8 }
 0x219   :  { %v275_v12 = vadd.f32 %v353_v6, %v274_v10 }
 0x21b   :  { %v279_v14 = vsel %vm278_vm7, %v353_v6, %v275_v12 }
 0x21c   :  { %v284_v15 = vsel %vm281_vm8, %v283_v13, %v279_v14 }
 0x21d   :  { %286 = vst [vmem:[#allocation3] sm:$0x1] %v284_v15 }
 0x21e   :  { %297 = dma.vmem_to_hbm [thread:$0]  %s293_s5, 16, %s295_s14, [#allocation4]  }
 0x21f   :  { %378 = dma.done.wait [#allocation4], 16  }
 0x220   :  { %379 = vsyncadd [#allocation4], 4294967280 }
 0x221   :  { %302 = vsyncpa [#allocation4], 1 }

</bundles_post_ra>
